<compile_context>
chip_gen: v7x
topology: tpu7x:2x2x1
jax: 0.10.0
libtpu: 0.0.40
codegen_flags: <defaults>
</compile_context>

<pallas_src>
import jax
import jax.numpy as jnp
from jax.experimental import pallas as pl
from jax.experimental.pallas import tpu as pltpu

_LANE_CANDIDATES = (1024, 512, 256, 128)   # lane width: largest divisor wins
_MIN_KERNEL_ELEMS = 1 << 18                # below this, fused XLA multiply wins
_TARGET_BLOCK_BYTES = 8 * 1024 * 1024      # ~8 MiB per in/out tile
_VMEM_LIMIT_BYTES = 40 * 1024 * 1024       # 2 arrays x 2 buffers x 8 MiB + slack


def _scale_kernel(s_ref, x_ref, o_ref):
    # s_ref: (1, 1) f32 scalar in SMEM; x_ref / o_ref: (TM, LANE) VMEM tiles.
    # Cast the *scalar* to the tile dtype so bf16/f16 compute stays narrow.
    s = s_ref[0, 0].astype(o_ref.dtype)
    o_ref[...] = x_ref[...] * s


def _pick_tile_rows(rows: int, lane: int, itemsize: int) -> int:
    """Row-tile: ~8 MiB per buffer, multiple of 8, and >= 2 blocks in the grid."""
    tm = _TARGET_BLOCK_BYTES // (lane * itemsize)
    tm = max(8, (tm // 8) * 8)
    # Cap at ~half the rows (rounded up to a sublane multiple) so the grid has
    # at least two blocks -> both v7x TensorCores get work + pipeline overlap.
    half = -(-rows // 2)                       # ceil(rows / 2)
    half = max(8, ((half + 7) // 8) * 8)       # round up to multiple of 8
    return max(8, min(tm, half, rows))


def scale_forward(x: jax.Array, scale: jax.Array) -> jax.Array:
    """Multiply input of any shape by a learnable scalar `scale` (shape ())."""
    orig_shape = x.shape

    # Integer / bool inputs: PyTorch promotes to float32 (0-d float param wins
    # the category).  Plain JAX handles this correctly and cheaply.
    if not jnp.issubdtype(x.dtype, jnp.floating):
        return x.astype(jnp.float32) * jnp.asarray(scale, jnp.float32)

    total = int(x.size)

    # Small tensors (also 0-d / empty): launch overhead + lost XLA fusion make
    # a Pallas call a pure loss; the fused multiply is already at roofline.
    if total < _MIN_KERNEL_ELEMS:
        return x * jnp.asarray(scale, x.dtype)

    # Lane-dense layout: largest 128-multiple lane width dividing the element
    # count (no padding pass).  If none divides, pad+slice would triple HBM
    # traffic on a bandwidth-bound op, so use the fused XLA multiply instead.
    lane = next((l for l in _LANE_CANDIDATES if total % l == 0), None)
    if lane is None:
        return x * jnp.asarray(scale, x.dtype)

    rows = total // lane
    itemsize = jnp.dtype(x.dtype).itemsize
    tm = _pick_tile_rows(rows, lane, itemsize)
    grid = (pl.cdiv(rows, tm),)                # ragged last block is masked by Pallas

    x2d = x.reshape(rows, lane)                # contiguous reshape: no copy
    s2d = jnp.asarray(scale, jnp.float32).reshape(1, 1)

    out2d = pl.pallas_call(
        _scale_kernel,
        out_shape=jax.ShapeDtypeStruct((rows, lane), x.dtype),
        grid=grid,
        in_specs=[
            pl.BlockSpec(memory_space=pltpu.MemorySpace.SMEM),   # scale scalar
            pl.BlockSpec((tm, lane), lambda i: (i, 0)),          # x tile
        ],
        out_specs=pl.BlockSpec((tm, lane), lambda i: (i, 0)),    # out tile
        compiler_params=pltpu.CompilerParams(
            dimension_semantics=("parallel",),
            vmem_limit_bytes=_VMEM_LIMIT_BYTES,
        ),
    )(s2d, x2d)

    return out2d.reshape(orig_shape)


class ScalePallas:
    """Mirrors dataset2metadata Scale: y = x * scale, scale init to `scale`."""

    def __init__(self, scale: float = 1.0):
        self.scale = jnp.asarray(scale, dtype=jnp.float32)

    def __call__(self, x: jax.Array) -> jax.Array:
        return scale_forward(x, self.scale)


if __name__ == "__main__":
    module = ScalePallas(scale=1.5)

    # Small detection-head feature map (2, 4, 16, 16): takes the fused-XLA
    # fallback path (kernel launch isn't worth it below ~256K elements).
    x_small = jax.random.normal(jax.random.PRNGKey(0), (2, 4, 16, 16), jnp.float32)
    y_small = jax.block_until_ready(module(x_small))
    assert y_small.shape == x_small.shape and y_small.dtype == x_small.dtype
    assert jnp.allclose(y_small, x_small * jnp.float32(1.5), atol=1e-6, rtol=1e-6)

    # Just large enough to take the Pallas path: lane=1024, rows=256, 2 tiles.
    x_big = jax.random.normal(jax.random.PRNGKey(0), (2, 128, 32, 32), jnp.float32)
    y_big = jax.block_until_ready(module(x_big))
    assert y_big.shape == x_big.shape and y_big.dtype == x_big.dtype
    assert jnp.allclose(y_big, x_big * jnp.float32(1.5), atol=1e-6, rtol=1e-6)

    # bf16 input: compute stays in bf16 inside the kernel.
    x_bf = x_big.astype(jnp.bfloat16)
    y_bf = jax.block_until_ready(module(x_bf))
    assert y_bf.dtype == jnp.bfloat16
    ref_bf = (x_bf * jnp.bfloat16(1.5)).astype(jnp.float32)
    assert jnp.allclose(y_bf.astype(jnp.float32), ref_bf, atol=1e-2, rtol=1e-2)

    # 128- but not 1024-divisible element count: lane drops to 128 but the row
    # tile grows to keep big blocks; still no pad/slice passes.
    x_odd = jax.random.normal(jax.random.PRNGKey(1), (2049, 128), jnp.float32)
    y_odd = jax.block_until_ready(module(x_odd))
    assert jnp.allclose(y_odd, x_odd * jnp.float32(1.5), atol=1e-6, rtol=1e-6)

    # Non-128-divisible size: fused XLA fallback (1 read + 1 write pass).
    x_rag = jax.random.normal(jax.random.PRNGKey(2), (3, 5, 7), jnp.float32)
    y_rag = jax.block_until_ready(module(x_rag))
    assert y_rag.shape == x_rag.shape and y_rag.dtype == x_rag.dtype
    assert jnp.allclose(y_rag, x_rag * jnp.float32(1.5), atol=1e-6, rtol=1e-6)

    print("KERNEL_OK")
</pallas_src>

<mosaic_0001>
module attributes {stable_mosaic.version = 11 : i64} {
  func.func @_scale_kernel(%arg0: i32, %arg1: memref<1x1xf32, #tpu.memory_space<smem>>, %arg2: memref<128x1024xf32, #tpu.memory_space<vmem>>, %arg3: memref<128x1024xf32, #tpu.memory_space<vmem>>) attributes {dimension_semantics = [#tpu.dimension_semantics<parallel>], iteration_bounds = array<i64: 2>, scalar_prefetch = 0 : i64, scratch_operands = 0 : i64, tpu.core_type = #tpu.core_type<tc>, window_params = [{transform_indices = @transform_0, window_bounds = array<i64: 1, 1>}, {transform_indices = @transform_1, window_bounds = array<i64: 128, 1024>}, {transform_indices = @transform_2, window_bounds = array<i64: 128, 1024>}]} {
    %c0 = arith.constant 0 : index
    %c0_0 = arith.constant 0 : index
    %0 = memref.load %arg1[%c0, %c0_0] : memref<1x1xf32, #tpu.memory_space<smem>>
    %c0_1 = arith.constant 0 : index
    %c0_2 = arith.constant 0 : index
    %1 = vector.load %arg2[%c0_1, %c0_2] : memref<128x1024xf32, #tpu.memory_space<vmem>>, vector<128x1024xf32>
    %2 = vector.broadcast %0 : f32 to vector<128x1024xf32>
    %3 = arith.mulf %1, %2 : vector<128x1024xf32>
    %c0_3 = arith.constant 0 : index
    %c0_4 = arith.constant 0 : index
    %4 = vector.load %arg3[%c0_3, %c0_4] : memref<128x1024xf32, #tpu.memory_space<vmem>>, vector<128x1024xf32>
    tpu.vector_store %arg3[%c0_3, %c0_4], %3 {strides = array<i32>} : memref<128x1024xf32, #tpu.memory_space<vmem>>, vector<128x1024xf32>,
    return
  }
  func.func @transform_0(%arg0: i32) -> (i32, i32) {
    %c0_i32 = arith.constant 0 : i32
    %c0_i32_0 = arith.constant 0 : i32
    %c0_i32_1 = arith.constant 0 : i32
    return %c0_i32, %c0_i32_0 : i32, i32
  }
  func.func @transform_1(%arg0: i32) -> (i32, i32) {
    %c0_i32 = arith.constant 0 : i32
    %c0_i32_0 = arith.constant 0 : i32
    return %arg0, %c0_i32 : i32, i32
  }
  func.func @transform_2(%arg0: i32) -> (i32, i32) {
    %c0_i32 = arith.constant 0 : i32
    %c0_i32_0 = arith.constant 0 : i32
    return %arg0, %c0_i32 : i32, i32
  }
}

</mosaic_0001>

<bundles_post_ra>
// kernel: tpu_custom_call.1
= control target key start
LH: loop header
LB: loop body
LE: loop exit
PB: predicated region body
PF: predicated region fallthrough
CT: control target
= control target key end

     0   :  { %s1385_s0 = inlined_call_operand.<no memory space> [shape: f32[1,1], index: 0, kind: input, shape index: {}]   ;;  %s1386_s1 = inlined_call_operand.hbm [shape: f32[256,1024], index: 1, kind: input, shape index: {}]   ;;  %s1387_s2 = inlined_call_operand.hbm [shape: f32[256,1024], index: 2, kind: output, shape index: {}]  }
   0x1   :  { %7 = sst [smem:[#allocation2]] %s1385_s0 }
   0x2   :  { %8 = vsyncpa [#allocation4], 0 }
   0x3   :  { %10 = vsyncpa [#allocation4 + $0x1], 0 }
   0x4   :  { %11 = vsyncpa [#allocation5], 0 }
   0x5   :  { %13 = vsyncpa [#allocation5 + $0x1], 0  ;;  %s832_s11 = smov 0   ;;  %s834_s12 = smov 0  }
   0x6   :  { %s836_s13 = smov 0   ;;  %s838_s14 = smov 0  }
   0x7 LB: > { %s853_s0 = sadd.s32 4294967295, %s806_s14   ;;  %s640_s15 = sadd.s32 4294967294, %s806_s14   ;;  %s806_s14 = sphi %s838_s14, %s1400_s14   ;;  %s802_s13 = sphi %s836_s13, %s1399_s13   ;;  %s798_s12 = sphi %s834_s12, %s1398_s12   ;;  %s794_s11 = sphi %s832_s11, %s1397_s11  }
   0x8   : > { %s857_s16 = sadd.s32 1, %s806_s14   ;;  %s47_s17 = sadd.s32 1, %s802_s13 }
   0x9   : > { %s44_s18 = ssub.s32 %s806_s14, %s857_s16  ;;  %p54_p0 = scmp.ne.s32.totalorder %s802_s13, %s798_s12 }
   0xa   : > { %p45_p1 = scmp.eq.s32.totalorder %s44_s18, 0  ;;  %p55_p2 = scmp.eq.s32.totalorder %s806_s14, 0 }
   0xb   : > { %p60_p3 = scmp.ne.s32.totalorder %s798_s12, %s794_s11  ;;  %p61_p4 = scmp.eq.s32.totalorder %s853_s0, 0 }
   0xc   : > { %s869_s19 = scalar_select %p45_p1, %s802_s13, %s47_s17  }
   0xd   : > { %p871_p5 = por %p55_p2, %p54_p0  ;;  %p875_p6 = por %p61_p4, %p60_p3 }
   0xe   : > { %p84_p7 = scmp.eq.s32.totalorder %s853_s0, 1  ;;  %p90_p8 = scmp.eq.s32.totalorder %s640_s15, 1 }
   0xf   : > { %p672_p10 = scmp.lt.s32.totalorder %s806_s14, 2  ;;  %s113_s24 = sand.u32 1, %s802_s13  }
  0x10   : > { %p882_p11 = por %p84_p7, %p54_p0  ;;  %p886_p12 = por %p90_p8, %p60_p3 }
  0x11   : > { %s657_s25 = sshll.u32 %s806_s14, 14  ;;  %s643_s26 = sshll.u32 %s113_s24, 10 }
  0x12   : > { %s1391_s22 = scalar_select %p882_p11, 1, 0 }
  0x13   : > { %s1392_s23 = scalar_select %p886_p12, 1, 0 }
  0x14   : > { %s895_s29 = scalar_lea.hbm %s1386_s1, %s657_s25  ;;  %s117_s30 = scalar_lea.vmem [#allocation3], %s643_s26 }
  0x15   : > { %s125_s3 = sshll.u32 %s117_s30, 4  ;;  %p899_p13 = pnand %p672_p10, %p871_p5  ;;  %s903_s3 = int_to_ptr.vmem [resolvable:$true] %s125_s3 }
  0x16   : > { %s905_s5 = scalar_lea.sflag [#allocation4], %s113_s24  ;;  %s710_s6 = scalar_lea.hbm %s895_s29, 16384 }
  0x17   : > { %p711_p0 = scmp.ne.s32.totalorder %s895_s29, %s710_s6  ;;  %p712_p1 = pneg %p899_p13 }
  0x18   : > { %s715_s9 = scalar_lea.hbm %s1386_s1, 32768  ;;  %p716_p4 = scmp.lt.u32.totalorder %s895_s29, %s1386_s1 }
  0x19   : > { %p713_p2 = pnand %p712_p1, %p711_p0  ;;  %p717_p5 = scmp.lt.u32.totalorder %s715_s9, %s710_s6 }
  0x1a   : > { %p719_p8 = scmp.lt.u32.totalorder %s710_s6, %s895_s29 }
  0x1b   : > { %p714_p3 = pneg %p713_p2  ;;  %p718_p7 = por %p717_p5, %p716_p4 }
  0x1d   : > { %p720_p10 = por %p719_p8, %p718_p7 }
  0x1f   : > { %p721_p9 = pnand %p720_p10, %p714_p3 }
  0x21   : > { %724 = shalt.err (!%p721_p9)
}
  0x22   : > { %s725_s17 = scalar_lea.vmem %s903_s3, 16384  ;;  %s808_s18 = smov [#allocation3]  }
  0x23   : > { %p726_p0 = scmp.ne.s32.totalorder %s903_s3, %s725_s17  ;;  %s730_s20 = sshll.u32 %s808_s18, 4  ;;  %s731_s20 = int_to_ptr.vmem [resolvable:$false] %s730_s20 }
  0x24   : > { %s732_s24 = scalar_lea.vmem %s731_s20, 32768  ;;  %p733_p11 = scmp.lt.s32.totalorder %s903_s3, %s731_s20 }
  0x25   : > { %p728_p2 = pnand %p726_p0, %p712_p1  ;;  %p734_p4 = scmp.lt.s32.totalorder %s732_s24, %s725_s17 }
  0x27   : > { %p729_p12 = pneg %p728_p2  ;;  %p735_p5 = por %p734_p4, %p733_p11 }
  0x29   : > { %p736_p7 = pnand %p735_p5, %p729_p12 }
  0x2b   : > { %739 = shalt.err (!%p736_p7)
}
  0x2c   : > { %s809_s25 = smov 1024   ;;  %s810_s26 = smov 64  }
  0x2d   : > { %667 = dma.hbm_to_vmem [thread:$0]  (!%p899_p13), %s895_s29, 16384, %s903_s3, %s905_s5, %s809_s25, %s809_s25, %s810_s26  }
  0x2e   : > { %p647_p9 = scmp.ge.s32.totalorder %s806_s14, 1  ;;  %p133_p1 = scmp.lt.s32.totalorder %s806_s14, 3 }
  0x30   : > { %p134_p3 = pnand %p647_p9, %p133_p1 }
  0x31   : > { %s936_s27 = sand.u32 (!%p134_p3), 1, %s798_s12  }
  0x32   : > { %137 = sbr.rel (%p134_p3) target bundleno = 145 (0x91), region = 28  ;;  %s648_s28 = sshll.u32 (!%p134_p3), %s936_s27, 10 }
  0x33   : > { %s140_s30 = scalar_lea.sflag (!%p134_p3), [#allocation4], %s936_s27  ;;  %s940_s6 = scalar_lea.vmem (!%p134_p3), [#allocation3], %s648_s28 }
  0x39   : > { %785 = dma.done.wait (%p875_p6), %s140_s30, 16384  }
  0x3a   : > { %787 = vsyncadd (%p875_p6), %s140_s30, 4294950912  ;;  %s166_s29 = sld [smem:[#allocation2]]  ;;  %v167_v0 = vld [vmem:[%s940_s6] sm:$0xff]  ;;  %v168_v2 = vld [vmem:[%s940_s6 + $0x8] sm:$0xff]  ;;  %s963_s21 = scalar_lea.vmem [#allocation6], %s648_s28 }
  0x3b   : > { %v169_v3 = vld [vmem:[%s940_s6 + $0x10] sm:$0xff]  ;;  %v170_v7 = vld [vmem:[%s940_s6 + $0x18] sm:$0xff]  ;;  %v171_v8 = vld [vmem:[%s940_s6 + $0x20] sm:$0xff]  ;;  %s659_s3 = sshll.u32 %s853_s0, 14  ;;  %s567_s4 = sshll.u32 %s963_s21, 4  ;;  %s1331_s4 = int_to_ptr.vmem [resolvable:$true] %s567_s4 }
  0x3c   : > { %v172_v9 = vld [vmem:[%s940_s6 + $0x28] sm:$0xff]  ;;  %v173_v13 = vld [vmem:[%s940_s6 + $0x30] sm:$0xff]  ;;  %v174_v14 = vld [vmem:[%s940_s6 + $0x38] sm:$0xff]  ;;  %s1329_s7 = scalar_lea.hbm %s1387_s2, %s659_s3  ;;  %s553_s8 = scalar_lea.sflag [#allocation5], %s936_s27 }
  0x3d   : > { %v175_v15 = vld [vmem:[%s940_s6 + $0x40] sm:$0xff]  ;;  %v176_v19 = vld [vmem:[%s940_s6 + $0x48] sm:$0xff]  ;;  %v177_v20 = vld [vmem:[%s940_s6 + $0x50] sm:$0xff]  ;;  %s740_s9 = scalar_lea.vmem %s1331_s4, 16384  ;;  %p1394_p11 = scmp.ne.s32.totalorder %s1391_s22, 0 }
  0x3e   : > { %v178_v21 = vld [vmem:[%s940_s6 + $0x58] sm:$0xff]  ;;  %v179_v25 = vld [vmem:[%s940_s6 + $0x60] sm:$0xff]  ;;  %v180_v26 = vld [vmem:[%s940_s6 + $0x68] sm:$0xff]  ;;  %p741_p6 = scmp.ne.s32.totalorder %s1331_s4, %s740_s9  ;;  %s811_s10 = smov [#allocation6]  }
  0x3f   : > { %v181_v27 = vld [vmem:[%s940_s6 + $0x70] sm:$0xff]  ;;  %v182_v31 = vld [vmem:[%s940_s6 + $0x78] sm:$0xff]  ;;  %v183_v32 = vld [vmem:[%s940_s6 + $0x80] sm:$0xff]  ;;  %s744_s15 = sshll.u32 %s811_s10, 4  ;;  %s745_s15 = int_to_ptr.vmem [resolvable:$false] %s744_s15 }
  0x40   : > { %v947_v1 = vstv %s166_s29  ;;  %v184_v33 = vld [vmem:[%s940_s6 + $0x88] sm:$0xff]  ;;  %v185_v37 = vld [vmem:[%s940_s6 + $0x90] sm:$0xff]  ;;  %v186_v38 = vld [vmem:[%s940_s6 + $0x98] sm:$0xff]  ;;  %p742_p12 = pnand %p741_p6, %p1394_p11  ;;  %s746_s17 = scalar_lea.vmem %s745_s15, 32768 }
  0x41   : > { %v296_v4 = vmul.f32 %v947_v1, %v167_v0  ;;  %v297_v5 = vmul.f32 %v947_v1, %v168_v2  ;;  %v298_v6 = vmul.f32 %v947_v1, %v169_v3  ;;  %v299_v10 = vmul.f32 %v947_v1, %v170_v7  ;;  %v187_v39 = vld [vmem:[%s940_s6 + $0xa0] sm:$0xff]  ;;  %v188_v43 = vld [vmem:[%s940_s6 + $0xa8] sm:$0xff]  ;;  %v189_v44 = vld [vmem:[%s940_s6 + $0xb0] sm:$0xff]  ;;  %p747_p8 = scmp.lt.s32.totalorder %s1331_s4, %s745_s15  ;;  %p748_p10 = scmp.lt.s32.totalorder %s746_s17, %s740_s9 }
  0x42   : > { %v300_v11 = vmul.f32 %v947_v1, %v171_v8  ;;  %v301_v12 = vmul.f32 %v947_v1, %v172_v9  ;;  %v302_v16 = vmul.f32 %v947_v1, %v173_v13  ;;  %v303_v17 = vmul.f32 %v947_v1, %v174_v14  ;;  %v190_v45 = vld [vmem:[%s940_s6 + $0xb8] sm:$0xff]  ;;  %v191_v49 = vld [vmem:[%s940_s6 + $0xc0] sm:$0xff]  ;;  %v192_v50 = vld [vmem:[%s940_s6 + $0xc8] sm:$0xff]  ;;  %p743_p13 = pneg %p742_p12 }
  0x43   : > { %424 = vst [vmem:[%s963_s21] sm:$0xff] %v296_v4  ;;  %425 = vst [vmem:[%s963_s21 + $0x8] sm:$0xff] %v297_v5  ;;  %v304_v18 = vmul.f32 %v947_v1, %v175_v15  ;;  %v305_v22 = vmul.f32 %v947_v1, %v176_v19  ;;  %v306_v23 = vmul.f32 %v947_v1, %v177_v20  ;;  %v193_v51 = vld [vmem:[%s940_s6 + $0xd0] sm:$0xff]  ;;  %v194_v55 = vld [vmem:[%s940_s6 + $0xd8] sm:$0xff]  ;;  %p749_p0 = por %p748_p10, %p747_p8 }
  0x44   : > { %426 = vst [vmem:[%s963_s21 + $0x10] sm:$0xff] %v298_v6  ;;  %427 = vst [vmem:[%s963_s21 + $0x18] sm:$0xff] %v299_v10  ;;  %v307_v24 = vmul.f32 %v947_v1, %v178_v21  ;;  %v308_v28 = vmul.f32 %v947_v1, %v179_v25  ;;  %v309_v29 = vmul.f32 %v947_v1, %v180_v26  ;;  %v195_v56 = vld [vmem:[%s940_s6 + $0xe0] sm:$0xff]  ;;  %v196_v57 = vld [vmem:[%s940_s6 + $0xe8] sm:$0xff] }
  0x45   : > { %428 = vst [vmem:[%s963_s21 + $0x20] sm:$0xff] %v300_v11  ;;  %429 = vst [vmem:[%s963_s21 + $0x28] sm:$0xff] %v301_v12  ;;  %v310_v30 = vmul.f32 %v947_v1, %v181_v27  ;;  %v311_v34 = vmul.f32 %v947_v1, %v182_v31  ;;  %v312_v35 = vmul.f32 %v947_v1, %v183_v32  ;;  %v197_v61 = vld [vmem:[%s940_s6 + $0xf0] sm:$0xff]  ;;  %v198_v62 = vld [vmem:[%s940_s6 + $0xf8] sm:$0xff]  ;;  %p750_p2 = pnand %p749_p0, %p743_p13 }
  0x46   : > { %430 = vst [vmem:[%s963_s21 + $0x30] sm:$0xff] %v302_v16  ;;  %431 = vst [vmem:[%s963_s21 + $0x38] sm:$0xff] %v303_v17  ;;  %v313_v36 = vmul.f32 %v947_v1, %v184_v33  ;;  %v314_v40 = vmul.f32 %v947_v1, %v185_v37  ;;  %v315_v41 = vmul.f32 %v947_v1, %v186_v38  ;;  %v199_v63 = vld [vmem:[%s940_s6 + $0x100] sm:$0xff]  ;;  %v200_v4 = vld [vmem:[%s940_s6 + $0x108] sm:$0xff] }
  0x47   : > { %432 = vst [vmem:[%s963_s21 + $0x40] sm:$0xff] %v304_v18  ;;  %433 = vst [vmem:[%s963_s21 + $0x48] sm:$0xff] %v305_v22  ;;  %v316_v42 = vmul.f32 %v947_v1, %v187_v39  ;;  %v317_v46 = vmul.f32 %v947_v1, %v188_v43  ;;  %v318_v47 = vmul.f32 %v947_v1, %v189_v44  ;;  %v201_v5 = vld [vmem:[%s940_s6 + $0x110] sm:$0xff]  ;;  %v202_v6 = vld [vmem:[%s940_s6 + $0x118] sm:$0xff] }
  0x48   : > { %434 = vst [vmem:[%s963_s21 + $0x50] sm:$0xff] %v306_v23  ;;  %435 = vst [vmem:[%s963_s21 + $0x58] sm:$0xff] %v307_v24  ;;  %v319_v48 = vmul.f32 %v947_v1, %v190_v45  ;;  %v320_v52 = vmul.f32 %v947_v1, %v191_v49  ;;  %v321_v53 = vmul.f32 %v947_v1, %v192_v50  ;;  %v203_v10 = vld [vmem:[%s940_s6 + $0x120] sm:$0xff]  ;;  %v204_v11 = vld [vmem:[%s940_s6 + $0x128] sm:$0xff] }
  0x49   : > { %436 = vst [vmem:[%s963_s21 + $0x60] sm:$0xff] %v308_v28  ;;  %437 = vst [vmem:[%s963_s21 + $0x68] sm:$0xff] %v309_v29  ;;  %v322_v54 = vmul.f32 %v947_v1, %v193_v51  ;;  %v323_v58 = vmul.f32 %v947_v1, %v194_v55  ;;  %v324_v59 = vmul.f32 %v947_v1, %v195_v56  ;;  %v205_v12 = vld [vmem:[%s940_s6 + $0x130] sm:$0xff]  ;;  %v206_v16 = vld [vmem:[%s940_s6 + $0x138] sm:$0xff] }
  0x4a   : > { %438 = vst [vmem:[%s963_s21 + $0x70] sm:$0xff] %v310_v30  ;;  %439 = vst [vmem:[%s963_s21 + $0x78] sm:$0xff] %v311_v34  ;;  %v325_v60 = vmul.f32 %v947_v1, %v196_v57  ;;  %v326_v0 = vmul.f32 %v947_v1, %v197_v61  ;;  %v327_v2 = vmul.f32 %v947_v1, %v198_v62  ;;  %v207_v17 = vld [vmem:[%s940_s6 + $0x140] sm:$0xff]  ;;  %v208_v18 = vld [vmem:[%s940_s6 + $0x148] sm:$0xff] }
  0x4b   : > { %440 = vst [vmem:[%s963_s21 + $0x80] sm:$0xff] %v312_v35  ;;  %441 = vst [vmem:[%s963_s21 + $0x88] sm:$0xff] %v313_v36  ;;  %v328_v3 = vmul.f32 %v947_v1, %v199_v63  ;;  %v329_v7 = vmul.f32 %v947_v1, %v200_v4  ;;  %v330_v8 = vmul.f32 %v947_v1, %v201_v5  ;;  %v209_v22 = vld [vmem:[%s940_s6 + $0x150] sm:$0xff]  ;;  %v210_v23 = vld [vmem:[%s940_s6 + $0x158] sm:$0xff] }
  0x4c   : > { %442 = vst [vmem:[%s963_s21 + $0x90] sm:$0xff] %v314_v40  ;;  %443 = vst [vmem:[%s963_s21 + $0x98] sm:$0xff] %v315_v41  ;;  %v331_v9 = vmul.f32 %v947_v1, %v202_v6  ;;  %v332_v13 = vmul.f32 %v947_v1, %v203_v10  ;;  %v333_v14 = vmul.f32 %v947_v1, %v204_v11  ;;  %v211_v24 = vld [vmem:[%s940_s6 + $0x160] sm:$0xff]  ;;  %v212_v28 = vld [vmem:[%s940_s6 + $0x168] sm:$0xff] }
  0x4d   : > { %444 = vst [vmem:[%s963_s21 + $0xa0] sm:$0xff] %v316_v42  ;;  %445 = vst [vmem:[%s963_s21 + $0xa8] sm:$0xff] %v317_v46  ;;  %v334_v15 = vmul.f32 %v947_v1, %v205_v12  ;;  %v335_v19 = vmul.f32 %v947_v1, %v206_v16  ;;  %v336_v20 = vmul.f32 %v947_v1, %v207_v17  ;;  %v213_v29 = vld [vmem:[%s940_s6 + $0x170] sm:$0xff]  ;;  %v214_v30 = vld [vmem:[%s940_s6 + $0x178] sm:$0xff] }
  0x4e   : > { %446 = vst [vmem:[%s963_s21 + $0xb0] sm:$0xff] %v318_v47  ;;  %447 = vst [vmem:[%s963_s21 + $0xb8] sm:$0xff] %v319_v48  ;;  %v337_v21 = vmul.f32 %v947_v1, %v208_v18  ;;  %v338_v25 = vmul.f32 %v947_v1, %v209_v22  ;;  %v339_v26 = vmul.f32 %v947_v1, %v210_v23  ;;  %v215_v34 = vld [vmem:[%s940_s6 + $0x180] sm:$0xff]  ;;  %v216_v35 = vld [vmem:[%s940_s6 + $0x188] sm:$0xff] }
  0x4f   : > { %448 = vst [vmem:[%s963_s21 + $0xc0] sm:$0xff] %v320_v52  ;;  %449 = vst [vmem:[%s963_s21 + $0xc8] sm:$0xff] %v321_v53  ;;  %v340_v27 = vmul.f32 %v947_v1, %v211_v24  ;;  %v341_v31 = vmul.f32 %v947_v1, %v212_v28  ;;  %v342_v32 = vmul.f32 %v947_v1, %v213_v29  ;;  %v217_v36 = vld [vmem:[%s940_s6 + $0x190] sm:$0xff]  ;;  %v218_v40 = vld [vmem:[%s940_s6 + $0x198] sm:$0xff] }
  0x50   : > { %450 = vst [vmem:[%s963_s21 + $0xd0] sm:$0xff] %v322_v54  ;;  %451 = vst [vmem:[%s963_s21 + $0xd8] sm:$0xff] %v323_v58  ;;  %v343_v33 = vmul.f32 %v947_v1, %v214_v30  ;;  %v344_v37 = vmul.f32 %v947_v1, %v215_v34  ;;  %v345_v38 = vmul.f32 %v947_v1, %v216_v35  ;;  %v219_v41 = vld [vmem:[%s940_s6 + $0x1a0] sm:$0xff]  ;;  %v220_v42 = vld [vmem:[%s940_s6 + $0x1a8] sm:$0xff] }
  0x51   : > { %452 = vst [vmem:[%s963_s21 + $0xe0] sm:$0xff] %v324_v59  ;;  %453 = vst [vmem:[%s963_s21 + $0xe8] sm:$0xff] %v325_v60  ;;  %v346_v39 = vmul.f32 %v947_v1, %v217_v36  ;;  %v347_v43 = vmul.f32 %v947_v1, %v218_v40  ;;  %v348_v44 = vmul.f32 %v947_v1, %v219_v41  ;;  %v221_v46 = vld [vmem:[%s940_s6 + $0x1b0] sm:$0xff]  ;;  %v222_v47 = vld [vmem:[%s940_s6 + $0x1b8] sm:$0xff] }
  0x52   : > { %454 = vst [vmem:[%s963_s21 + $0xf0] sm:$0xff] %v326_v0  ;;  %455 = vst [vmem:[%s963_s21 + $0xf8] sm:$0xff] %v327_v2  ;;  %v349_v45 = vmul.f32 %v947_v1, %v220_v42  ;;  %v223_v48 = vld [vmem:[%s940_s6 + $0x1c0] sm:$0xff]  ;;  %v350_v49 = vmul.f32 %v947_v1, %v221_v46  ;;  %v351_v50 = vmul.f32 %v947_v1, %v222_v47  ;;  %v224_v52 = vld [vmem:[%s940_s6 + $0x1c8] sm:$0xff] }
  0x53   : > { %456 = vst [vmem:[%s963_s21 + $0x100] sm:$0xff] %v328_v3  ;;  %457 = vst [vmem:[%s963_s21 + $0x108] sm:$0xff] %v329_v7  ;;  %v352_v51 = vmul.f32 %v947_v1, %v223_v48  ;;  %v225_v53 = vld [vmem:[%s940_s6 + $0x1d0] sm:$0xff]  ;;  %v226_v54 = vld [vmem:[%s940_s6 + $0x1d8] sm:$0xff]  ;;  %v353_v55 = vmul.f32 %v947_v1, %v224_v52 }
  0x54   : > { %458 = vst [vmem:[%s963_s21 + $0x110] sm:$0xff] %v330_v8  ;;  %459 = vst [vmem:[%s963_s21 + $0x118] sm:$0xff] %v331_v9  ;;  %v354_v56 = vmul.f32 %v947_v1, %v225_v53  ;;  %v355_v57 = vmul.f32 %v947_v1, %v226_v54  ;;  %v227_v58 = vld [vmem:[%s940_s6 + $0x1e0] sm:$0xff]  ;;  %v228_v59 = vld [vmem:[%s940_s6 + $0x1e8] sm:$0xff] }
  0x55   : > { %460 = vst [vmem:[%s963_s21 + $0x120] sm:$0xff] %v332_v13  ;;  %461 = vst [vmem:[%s963_s21 + $0x128] sm:$0xff] %v333_v14  ;;  %v229_v60 = vld [vmem:[%s940_s6 + $0x1f0] sm:$0xff]  ;;  %v356_v61 = vmul.f32 %v947_v1, %v227_v58  ;;  %v357_v62 = vmul.f32 %v947_v1, %v228_v59  ;;  %v230_v0 = vld [vmem:[%s940_s6 + $0x1f8] sm:$0xff] }
  0x56   : > { %462 = vst [vmem:[%s963_s21 + $0x130] sm:$0xff] %v334_v15  ;;  %463 = vst [vmem:[%s963_s21 + $0x138] sm:$0xff] %v335_v19  ;;  %v358_v63 = vmul.f32 %v947_v1, %v229_v60  ;;  %v231_v2 = vld [vmem:[%s940_s6 + $0x200] sm:$0xff]  ;;  %v232_v3 = vld [vmem:[%s940_s6 + $0x208] sm:$0xff]  ;;  %v359_v4 = vmul.f32 %v947_v1, %v230_v0 }
  0x57   : > { %464 = vst [vmem:[%s963_s21 + $0x140] sm:$0xff] %v336_v20  ;;  %465 = vst [vmem:[%s963_s21 + $0x148] sm:$0xff] %v337_v21  ;;  %v360_v5 = vmul.f32 %v947_v1, %v231_v2  ;;  %v361_v6 = vmul.f32 %v947_v1, %v232_v3  ;;  %v233_v7 = vld [vmem:[%s940_s6 + $0x210] sm:$0xff]  ;;  %v234_v8 = vld [vmem:[%s940_s6 + $0x218] sm:$0xff] }
  0x58   : > { %466 = vst [vmem:[%s963_s21 + $0x150] sm:$0xff] %v338_v25  ;;  %467 = vst [vmem:[%s963_s21 + $0x158] sm:$0xff] %v339_v26  ;;  %v235_v9 = vld [vmem:[%s940_s6 + $0x220] sm:$0xff]  ;;  %v362_v10 = vmul.f32 %v947_v1, %v233_v7  ;;  %v363_v11 = vmul.f32 %v947_v1, %v234_v8  ;;  %v236_v13 = vld [vmem:[%s940_s6 + $0x228] sm:$0xff] }
  0x59   : > { %468 = vst [vmem:[%s963_s21 + $0x160] sm:$0xff] %v340_v27  ;;  %469 = vst [vmem:[%s963_s21 + $0x168] sm:$0xff] %v341_v31  ;;  %v364_v12 = vmul.f32 %v947_v1, %v235_v9  ;;  %v237_v14 = vld [vmem:[%s940_s6 + $0x230] sm:$0xff]  ;;  %v238_v15 = vld [vmem:[%s940_s6 + $0x238] sm:$0xff]  ;;  %v365_v16 = vmul.f32 %v947_v1, %v236_v13 }
  0x5a   : > { %470 = vst [vmem:[%s963_s21 + $0x170] sm:$0xff] %v342_v32  ;;  %471 = vst [vmem:[%s963_s21 + $0x178] sm:$0xff] %v343_v33  ;;  %v366_v17 = vmul.f32 %v947_v1, %v237_v14  ;;  %v367_v18 = vmul.f32 %v947_v1, %v238_v15  ;;  %v239_v19 = vld [vmem:[%s940_s6 + $0x240] sm:$0xff]  ;;  %v240_v20 = vld [vmem:[%s940_s6 + $0x248] sm:$0xff] }
  0x5b   : > { %472 = vst [vmem:[%s963_s21 + $0x180] sm:$0xff] %v344_v37  ;;  %473 = vst [vmem:[%s963_s21 + $0x188] sm:$0xff] %v345_v38  ;;  %v241_v21 = vld [vmem:[%s940_s6 + $0x250] sm:$0xff]  ;;  %v368_v22 = vmul.f32 %v947_v1, %v239_v19  ;;  %v369_v23 = vmul.f32 %v947_v1, %v240_v20  ;;  %v242_v25 = vld [vmem:[%s940_s6 + $0x258] sm:$0xff] }
  0x5c   : > { %474 = vst [vmem:[%s963_s21 + $0x190] sm:$0xff] %v346_v39  ;;  %475 = vst [vmem:[%s963_s21 + $0x198] sm:$0xff] %v347_v43  ;;  %v370_v24 = vmul.f32 %v947_v1, %v241_v21  ;;  %v243_v26 = vld [vmem:[%s940_s6 + $0x260] sm:$0xff]  ;;  %v244_v27 = vld [vmem:[%s940_s6 + $0x268] sm:$0xff]  ;;  %v371_v28 = vmul.f32 %v947_v1, %v242_v25 }
  0x5d   : > { %476 = vst [vmem:[%s963_s21 + $0x1a0] sm:$0xff] %v348_v44  ;;  %477 = vst [vmem:[%s963_s21 + $0x1a8] sm:$0xff] %v349_v45  ;;  %v372_v29 = vmul.f32 %v947_v1, %v243_v26  ;;  %v373_v30 = vmul.f32 %v947_v1, %v244_v27  ;;  %v245_v31 = vld [vmem:[%s940_s6 + $0x270] sm:$0xff]  ;;  %v246_v32 = vld [vmem:[%s940_s6 + $0x278] sm:$0xff] }
  0x5e   : > { %478 = vst [vmem:[%s963_s21 + $0x1b0] sm:$0xff] %v350_v49  ;;  %479 = vst [vmem:[%s963_s21 + $0x1b8] sm:$0xff] %v351_v50  ;;  %v247_v33 = vld [vmem:[%s940_s6 + $0x280] sm:$0xff]  ;;  %v374_v34 = vmul.f32 %v947_v1, %v245_v31  ;;  %v375_v35 = vmul.f32 %v947_v1, %v246_v32  ;;  %v248_v37 = vld [vmem:[%s940_s6 + $0x288] sm:$0xff] }
  0x5f   : > { %480 = vst [vmem:[%s963_s21 + $0x1c0] sm:$0xff] %v352_v51  ;;  %481 = vst [vmem:[%s963_s21 + $0x1c8] sm:$0xff] %v353_v55  ;;  %v376_v36 = vmul.f32 %v947_v1, %v247_v33  ;;  %v249_v38 = vld [vmem:[%s940_s6 + $0x290] sm:$0xff]  ;;  %v250_v39 = vld [vmem:[%s940_s6 + $0x298] sm:$0xff]  ;;  %v377_v40 = vmul.f32 %v947_v1, %v248_v37 }
  0x60   : > { %482 = vst [vmem:[%s963_s21 + $0x1d0] sm:$0xff] %v354_v56  ;;  %483 = vst [vmem:[%s963_s21 + $0x1d8] sm:$0xff] %v355_v57  ;;  %v378_v41 = vmul.f32 %v947_v1, %v249_v38  ;;  %v379_v42 = vmul.f32 %v947_v1, %v250_v39  ;;  %v251_v43 = vld [vmem:[%s940_s6 + $0x2a0] sm:$0xff]  ;;  %v252_v44 = vld [vmem:[%s940_s6 + $0x2a8] sm:$0xff] }
  0x61   : > { %484 = vst [vmem:[%s963_s21 + $0x1e0] sm:$0xff] %v356_v61  ;;  %485 = vst [vmem:[%s963_s21 + $0x1e8] sm:$0xff] %v357_v62  ;;  %v253_v45 = vld [vmem:[%s940_s6 + $0x2b0] sm:$0xff]  ;;  %v380_v46 = vmul.f32 %v947_v1, %v251_v43  ;;  %v381_v47 = vmul.f32 %v947_v1, %v252_v44  ;;  %v254_v49 = vld [vmem:[%s940_s6 + $0x2b8] sm:$0xff] }
  0x62   : > { %486 = vst [vmem:[%s963_s21 + $0x1f0] sm:$0xff] %v358_v63  ;;  %487 = vst [vmem:[%s963_s21 + $0x1f8] sm:$0xff] %v359_v4  ;;  %v382_v48 = vmul.f32 %v947_v1, %v253_v45  ;;  %v255_v50 = vld [vmem:[%s940_s6 + $0x2c0] sm:$0xff]  ;;  %v256_v51 = vld [vmem:[%s940_s6 + $0x2c8] sm:$0xff]  ;;  %v383_v52 = vmul.f32 %v947_v1, %v254_v49 }
  0x63   : > { %488 = vst [vmem:[%s963_s21 + $0x200] sm:$0xff] %v360_v5  ;;  %489 = vst [vmem:[%s963_s21 + $0x208] sm:$0xff] %v361_v6  ;;  %v384_v53 = vmul.f32 %v947_v1, %v255_v50  ;;  %v385_v54 = vmul.f32 %v947_v1, %v256_v51  ;;  %v257_v55 = vld [vmem:[%s940_s6 + $0x2d0] sm:$0xff]  ;;  %v258_v56 = vld [vmem:[%s940_s6 + $0x2d8] sm:$0xff] }
  0x64   : > { %490 = vst [vmem:[%s963_s21 + $0x210] sm:$0xff] %v362_v10  ;;  %491 = vst [vmem:[%s963_s21 + $0x218] sm:$0xff] %v363_v11  ;;  %v259_v57 = vld [vmem:[%s940_s6 + $0x2e0] sm:$0xff]  ;;  %v386_v58 = vmul.f32 %v947_v1, %v257_v55  ;;  %v387_v59 = vmul.f32 %v947_v1, %v258_v56  ;;  %v260_v61 = vld [vmem:[%s940_s6 + $0x2e8] sm:$0xff] }
  0x65   : > { %492 = vst [vmem:[%s963_s21 + $0x220] sm:$0xff] %v364_v12  ;;  %493 = vst [vmem:[%s963_s21 + $0x228] sm:$0xff] %v365_v16  ;;  %v388_v60 = vmul.f32 %v947_v1, %v259_v57  ;;  %v261_v62 = vld [vmem:[%s940_s6 + $0x2f0] sm:$0xff]  ;;  %v262_v63 = vld [vmem:[%s940_s6 + $0x2f8] sm:$0xff]  ;;  %v389_v0 = vmul.f32 %v947_v1, %v260_v61 }
  0x66   : > { %494 = vst [vmem:[%s963_s21 + $0x230] sm:$0xff] %v366_v17  ;;  %495 = vst [vmem:[%s963_s21 + $0x238] sm:$0xff] %v367_v18  ;;  %v390_v2 = vmul.f32 %v947_v1, %v261_v62  ;;  %v391_v3 = vmul.f32 %v947_v1, %v262_v63  ;;  %v263_v4 = vld [vmem:[%s940_s6 + $0x300] sm:$0xff]  ;;  %v264_v5 = vld [vmem:[%s940_s6 + $0x308] sm:$0xff] }
  0x67   : > { %496 = vst [vmem:[%s963_s21 + $0x240] sm:$0xff] %v368_v22  ;;  %497 = vst [vmem:[%s963_s21 + $0x248] sm:$0xff] %v369_v23  ;;  %v265_v6 = vld [vmem:[%s940_s6 + $0x310] sm:$0xff]  ;;  %v392_v7 = vmul.f32 %v947_v1, %v263_v4  ;;  %v393_v8 = vmul.f32 %v947_v1, %v264_v5  ;;  %v266_v10 = vld [vmem:[%s940_s6 + $0x318] sm:$0xff] }
  0x68   : > { %498 = vst [vmem:[%s963_s21 + $0x250] sm:$0xff] %v370_v24  ;;  %499 = vst [vmem:[%s963_s21 + $0x258] sm:$0xff] %v371_v28  ;;  %v394_v9 = vmul.f32 %v947_v1, %v265_v6  ;;  %v267_v11 = vld [vmem:[%s940_s6 + $0x320] sm:$0xff]  ;;  %v268_v12 = vld [vmem:[%s940_s6 + $0x328] sm:$0xff]  ;;  %v395_v13 = vmul.f32 %v947_v1, %v266_v10 }
  0x69   : > { %500 = vst [vmem:[%s963_s21 + $0x260] sm:$0xff] %v372_v29  ;;  %501 = vst [vmem:[%s963_s21 + $0x268] sm:$0xff] %v373_v30  ;;  %v396_v14 = vmul.f32 %v947_v1, %v267_v11  ;;  %v397_v15 = vmul.f32 %v947_v1, %v268_v12  ;;  %v269_v16 = vld [vmem:[%s940_s6 + $0x330] sm:$0xff]  ;;  %v270_v17 = vld [vmem:[%s940_s6 + $0x338] sm:$0xff] }
  0x6a   : > { %502 = vst [vmem:[%s963_s21 + $0x270] sm:$0xff] %v374_v34  ;;  %503 = vst [vmem:[%s963_s21 + $0x278] sm:$0xff] %v375_v35  ;;  %v271_v18 = vld [vmem:[%s940_s6 + $0x340] sm:$0xff]  ;;  %v398_v19 = vmul.f32 %v947_v1, %v269_v16  ;;  %v399_v20 = vmul.f32 %v947_v1, %v270_v17  ;;  %v272_v22 = vld [vmem:[%s940_s6 + $0x348] sm:$0xff] }
  0x6b   : > { %504 = vst [vmem:[%s963_s21 + $0x280] sm:$0xff] %v376_v36  ;;  %505 = vst [vmem:[%s963_s21 + $0x288] sm:$0xff] %v377_v40  ;;  %v400_v21 = vmul.f32 %v947_v1, %v271_v18  ;;  %v273_v23 = vld [vmem:[%s940_s6 + $0x350] sm:$0xff]  ;;  %v274_v24 = vld [vmem:[%s940_s6 + $0x358] sm:$0xff]  ;;  %v401_v25 = vmul.f32 %v947_v1, %v272_v22 }
  0x6c   : > { %506 = vst [vmem:[%s963_s21 + $0x290] sm:$0xff] %v378_v41  ;;  %507 = vst [vmem:[%s963_s21 + $0x298] sm:$0xff] %v379_v42  ;;  %v402_v26 = vmul.f32 %v947_v1, %v273_v23  ;;  %v403_v27 = vmul.f32 %v947_v1, %v274_v24  ;;  %v275_v28 = vld [vmem:[%s940_s6 + $0x360] sm:$0xff]  ;;  %v276_v29 = vld [vmem:[%s940_s6 + $0x368] sm:$0xff] }
  0x6d   : > { %508 = vst [vmem:[%s963_s21 + $0x2a0] sm:$0xff] %v380_v46  ;;  %509 = vst [vmem:[%s963_s21 + $0x2a8] sm:$0xff] %v381_v47  ;;  %v277_v30 = vld [vmem:[%s940_s6 + $0x370] sm:$0xff]  ;;  %v404_v31 = vmul.f32 %v947_v1, %v275_v28  ;;  %v405_v32 = vmul.f32 %v947_v1, %v276_v29  ;;  %v278_v34 = vld [vmem:[%s940_s6 + $0x378] sm:$0xff] }
  0x6e   : > { %510 = vst [vmem:[%s963_s21 + $0x2b0] sm:$0xff] %v382_v48  ;;  %511 = vst [vmem:[%s963_s21 + $0x2b8] sm:$0xff] %v383_v52  ;;  %v406_v33 = vmul.f32 %v947_v1, %v277_v30  ;;  %v279_v35 = vld [vmem:[%s940_s6 + $0x380] sm:$0xff]  ;;  %v280_v36 = vld [vmem:[%s940_s6 + $0x388] sm:$0xff]  ;;  %v407_v37 = vmul.f32 %v947_v1, %v278_v34 }
  0x6f   : > { %512 = vst [vmem:[%s963_s21 + $0x2c0] sm:$0xff] %v384_v53  ;;  %513 = vst [vmem:[%s963_s21 + $0x2c8] sm:$0xff] %v385_v54  ;;  %v408_v38 = vmul.f32 %v947_v1, %v279_v35  ;;  %v409_v39 = vmul.f32 %v947_v1, %v280_v36  ;;  %v281_v40 = vld [vmem:[%s940_s6 + $0x390] sm:$0xff]  ;;  %v282_v41 = vld [vmem:[%s940_s6 + $0x398] sm:$0xff] }
  0x70   : > { %514 = vst [vmem:[%s963_s21 + $0x2d0] sm:$0xff] %v386_v58  ;;  %515 = vst [vmem:[%s963_s21 + $0x2d8] sm:$0xff] %v387_v59  ;;  %v283_v42 = vld [vmem:[%s940_s6 + $0x3a0] sm:$0xff]  ;;  %v410_v43 = vmul.f32 %v947_v1, %v281_v40  ;;  %v411_v44 = vmul.f32 %v947_v1, %v282_v41  ;;  %v284_v46 = vld [vmem:[%s940_s6 + $0x3a8] sm:$0xff] }
  0x71   : > { %516 = vst [vmem:[%s963_s21 + $0x2e0] sm:$0xff] %v388_v60  ;;  %517 = vst [vmem:[%s963_s21 + $0x2e8] sm:$0xff] %v389_v0  ;;  %v412_v45 = vmul.f32 %v947_v1, %v283_v42  ;;  %v285_v47 = vld [vmem:[%s940_s6 + $0x3b0] sm:$0xff]  ;;  %v286_v48 = vld [vmem:[%s940_s6 + $0x3b8] sm:$0xff]  ;;  %v413_v49 = vmul.f32 %v947_v1, %v284_v46 }
  0x72   : > { %518 = vst [vmem:[%s963_s21 + $0x2f0] sm:$0xff] %v390_v2  ;;  %519 = vst [vmem:[%s963_s21 + $0x2f8] sm:$0xff] %v391_v3  ;;  %v414_v50 = vmul.f32 %v947_v1, %v285_v47  ;;  %v415_v51 = vmul.f32 %v947_v1, %v286_v48  ;;  %v287_v52 = vld [vmem:[%s940_s6 + $0x3c0] sm:$0xff]  ;;  %v288_v53 = vld [vmem:[%s940_s6 + $0x3c8] sm:$0xff] }
  0x73   : > { %520 = vst [vmem:[%s963_s21 + $0x300] sm:$0xff] %v392_v7  ;;  %521 = vst [vmem:[%s963_s21 + $0x308] sm:$0xff] %v393_v8  ;;  %v289_v54 = vld [vmem:[%s940_s6 + $0x3d0] sm:$0xff]  ;;  %v416_v55 = vmul.f32 %v947_v1, %v287_v52  ;;  %v417_v56 = vmul.f32 %v947_v1, %v288_v53  ;;  %v290_v58 = vld [vmem:[%s940_s6 + $0x3d8] sm:$0xff] }
  0x74   : > { %522 = vst [vmem:[%s963_s21 + $0x310] sm:$0xff] %v394_v9  ;;  %523 = vst [vmem:[%s963_s21 + $0x318] sm:$0xff] %v395_v13  ;;  %v418_v57 = vmul.f32 %v947_v1, %v289_v54  ;;  %v291_v59 = vld [vmem:[%s940_s6 + $0x3e0] sm:$0xff]  ;;  %v292_v60 = vld [vmem:[%s940_s6 + $0x3e8] sm:$0xff]  ;;  %v419_v61 = vmul.f32 %v947_v1, %v290_v58 }
  0x75   : > { %524 = vst [vmem:[%s963_s21 + $0x320] sm:$0xff] %v396_v14  ;;  %525 = vst [vmem:[%s963_s21 + $0x328] sm:$0xff] %v397_v15  ;;  %v420_v62 = vmul.f32 %v947_v1, %v291_v59  ;;  %v421_v63 = vmul.f32 %v947_v1, %v292_v60  ;;  %v293_v0 = vld [vmem:[%s940_s6 + $0x3f0] sm:$0xff]  ;;  %v294_v2 = vld [vmem:[%s940_s6 + $0x3f8] sm:$0xff] }
  0x76   : > { %526 = vst [vmem:[%s963_s21 + $0x330] sm:$0xff] %v398_v19  ;;  %527 = vst [vmem:[%s963_s21 + $0x338] sm:$0xff] %v399_v20  ;;  %v422_v3 = vmul.f32 %v947_v1, %v293_v0  ;;  %v423_v4 = vmul.f32 %v947_v1, %v294_v2 }
  0x77   : > { %528 = vst [vmem:[%s963_s21 + $0x340] sm:$0xff] %v400_v21  ;;  %529 = vst [vmem:[%s963_s21 + $0x348] sm:$0xff] %v401_v25 }
  0x78   : > { %530 = vst [vmem:[%s963_s21 + $0x350] sm:$0xff] %v402_v26  ;;  %531 = vst [vmem:[%s963_s21 + $0x358] sm:$0xff] %v403_v27 }
  0x79   : > { %532 = vst [vmem:[%s963_s21 + $0x360] sm:$0xff] %v404_v31  ;;  %533 = vst [vmem:[%s963_s21 + $0x368] sm:$0xff] %v405_v32 }
  0x7a   : > { %534 = vst [vmem:[%s963_s21 + $0x370] sm:$0xff] %v406_v33  ;;  %535 = vst [vmem:[%s963_s21 + $0x378] sm:$0xff] %v407_v37 }
  0x7b   : > { %536 = vst [vmem:[%s963_s21 + $0x380] sm:$0xff] %v408_v38  ;;  %537 = vst [vmem:[%s963_s21 + $0x388] sm:$0xff] %v409_v39 }
  0x7c   : > { %538 = vst [vmem:[%s963_s21 + $0x390] sm:$0xff] %v410_v43  ;;  %539 = vst [vmem:[%s963_s21 + $0x398] sm:$0xff] %v411_v44 }
  0x7d   : > { %540 = vst [vmem:[%s963_s21 + $0x3a0] sm:$0xff] %v412_v45  ;;  %541 = vst [vmem:[%s963_s21 + $0x3a8] sm:$0xff] %v413_v49 }
  0x7e   : > { %542 = vst [vmem:[%s963_s21 + $0x3b0] sm:$0xff] %v414_v50  ;;  %543 = vst [vmem:[%s963_s21 + $0x3b8] sm:$0xff] %v415_v51 }
  0x7f   : > { %544 = vst [vmem:[%s963_s21 + $0x3c0] sm:$0xff] %v416_v55  ;;  %545 = vst [vmem:[%s963_s21 + $0x3c8] sm:$0xff] %v417_v56 }
  0x80   : > { %546 = vst [vmem:[%s963_s21 + $0x3d0] sm:$0xff] %v418_v57  ;;  %547 = vst [vmem:[%s963_s21 + $0x3d8] sm:$0xff] %v419_v61 }
  0x81   : > { %548 = vst [vmem:[%s963_s21 + $0x3e0] sm:$0xff] %v420_v62  ;;  %549 = vst [vmem:[%s963_s21 + $0x3e8] sm:$0xff] %v421_v63 }
  0x82   : > { %550 = vst [vmem:[%s963_s21 + $0x3f0] sm:$0xff] %v422_v3  ;;  %551 = vst [vmem:[%s963_s21 + $0x3f8] sm:$0xff] %v423_v4 }
  0x83   : > { %753 = shalt.err (!%p750_p2)
}
  0x84   : > { %s754_s18 = scalar_lea.hbm %s1329_s7, 16384  ;;  %s758_s25 = scalar_lea.hbm %s1387_s2, 32768 }
  0x85   : > { %p755_p4 = scmp.ne.s32.totalorder %s1329_s7, %s754_s18  ;;  %p759_p9 = scmp.lt.u32.totalorder %s1329_s7, %s1387_s2 }
  0x86   : > { %p760_p1 = scmp.lt.u32.totalorder %s758_s25, %s754_s18  ;;  %p762_p6 = scmp.lt.u32.totalorder %s754_s18, %s1329_s7 }
  0x87   : > { %p756_p5 = pnand %p755_p4, %p1394_p11 }
  0x88   : > { %p761_p3 = por %p760_p1, %p759_p9 }
  0x89   : > { %p757_p7 = pneg %p756_p5 }
  0x8a   : > { %p763_p12 = por %p762_p6, %p761_p3 }
  0x8c   : > { %p764_p13 = pnand %p763_p12, %p757_p7 }
  0x8e   : > { %767 = shalt.err (!%p764_p13)
}
  0x8f   : > { %s812_s30 = smov 1024   ;;  %s813_s6 = smov 64  }
  0x90   : > { %662 = dma.vmem_to_hbm [thread:$0]  (%p1394_p11), %s1331_s4, 16384, %s1329_s7, %s553_s8, %s812_s30, %s812_s30, %s813_s6  }
  0x91 PF: > { %s582_s29 = sand.u32 1, %s794_s11   ;;  %p1395_p8 = scmp.ne.s32.totalorder %s1392_s23, 0 }
  0x92   : > { %p1396_p10 = scmp.ge.s32.totalorder %s806_s14, 2  ;;  %s583_s21 = scalar_lea.sflag [#allocation5], %s582_s29 }
  0x94   : > { %p669_p0 = pnand %p1396_p10, %p1395_p8 }
  0x96   : > { %789 = dma.done.wait (!%p669_p0), %s583_s21, 16384  }
  0x97   : > { %791 = vsyncadd (!%p669_p0), %s583_s21, 4294950912  ;;  %p16_p2 = scmp.ge.s32.totalorder %s857_s16, 4   ;;  %s1397_s11 = smov %s798_s12 }
  0x98   : > { %s1398_s12 = smov %s802_s13  ;;  %s1399_s13 = smov %s869_s19 }
  0x99   : > { %s1400_s14 = smov %s857_s16  ;;  %18 = sbr.rel (!%p16_p2) target bundleno = 7 (0x7), region = 73 }
  0xa0   :  { %588 = vsyncpa [#allocation4], 1 }
  0xa1   :  { %590 = vsyncpa [#allocation4 + $0x1], 1 }
  0xa2   :  { %591 = vsyncpa [#allocation5], 1 }
  0xa3   :  { %593 = vsyncpa [#allocation5 + $0x1], 1 }

</bundles_post_ra>
